<compile_context>
chip_gen: v6e
topology: v6e:2x2x1
jax: 0.10.0
libtpu: 0.0.40
codegen_flags: <defaults>
</compile_context>

<pallas_src>
import jax
import jax.numpy as jnp
from jax.experimental import pallas as pl
from jax.experimental.pallas import tpu as pltpu


HP = 128          # padded hidden width  (lane-dense)
OP = 128          # padded output width  (lane-dense)
NCAT = HP + OP    # fused i2h+i2o output width
NEG_INF = -1e30   # softmax-neutral bias for output padding lanes


def fused_rnn_kernel(t_ref, wx_ref, wh_ref, b_ref,
                     logp_ref, hid_ref, h_carry):
    """One grid step == one time step of the Elman RNN recurrence.

    t_ref:    (1, B, I)   input at time step s (block of the (SEQ,B,I) array)
    wx_ref:   (I, NCAT)   fused [i2h | i2o] weight, input part (resident)
    wh_ref:   (HP, NCAT)  fused [i2h | i2o] weight, hidden part (resident)
    b_ref:    (1, NCAT)   fused bias (resident; output padding lanes = -1e30)
    logp_ref: (1, B, OP)  per-step log-softmax output slab (lane-dense)
    hid_ref:  (B, HP)     final hidden state (written at last step only)
    h_carry:  (B, HP)     VMEM scratch carrying the hidden state across steps
    """
    s = pl.program_id(0)

    @pl.when(s == 0)
    def _():
        h_carry[...] = jnp.zeros_like(h_carry)

    t = t_ref[0]            # (B, I)
    h = h_carry[...]        # (B, HP)

    # cat([t, h]) @ [W_i2h | W_i2o] + b  ==  t @ W_x + h @ W_h + b
    pre = (jnp.dot(t, wx_ref[...], preferred_element_type=jnp.float32)
           + jnp.dot(h, wh_ref[...], preferred_element_type=jnp.float32)
           + b_ref[...])    # (B, NCAT)

    # Hidden part (lanes [0:HP)).  Padding lanes: 0-weights + 0-bias -> tanh(0)=0,
    # so the padded hidden lanes stay exactly zero across the recurrence.
    new_h = jnp.tanh(pre[:, :HP])

    # Output part (lanes [HP:NCAT)).  Padding lanes sit at ~-1e30, so the
    # 128-lane log_softmax equals the O-lane one; padding is sliced off outside.
    logits = pre[:, HP:]
    m = jnp.max(logits, axis=-1, keepdims=True)
    shifted = logits - m
    lse = jnp.log(jnp.sum(jnp.exp(shifted), axis=-1, keepdims=True))

    logp_ref[0] = shifted - lse          # lane-dense (B, 128) store
    h_carry[...] = new_h

    @pl.when(s == pl.num_programs(0) - 1)
    def _():
        hid_ref[...] = new_h


def make_forward(hidden_size, output_size):
    """Returns a jitted forward(seq, w_x, w_h, b) -> (log_probs, final_hidden)."""

    @jax.jit
    def forward(seq, w_x, w_h, b):
        SEQ, B, I = seq.shape
        logp_pad, hid_pad = pl.pallas_call(
            fused_rnn_kernel,
            out_shape=(jax.ShapeDtypeStruct((SEQ, B, OP), jnp.float32),
                       jax.ShapeDtypeStruct((B, HP), jnp.float32)),
            grid_spec=pltpu.PrefetchScalarGridSpec(
                num_scalar_prefetch=0,
                grid=(SEQ,),
                in_specs=[
                    # per-step input block
                    pl.BlockSpec((1, B, I), lambda s: (s, 0, 0)),
                    # weights / bias: constant index_map -> DMA'd once, resident
                    pl.BlockSpec((I, NCAT), lambda s: (0, 0)),
                    pl.BlockSpec((HP, NCAT), lambda s: (0, 0)),
                    pl.BlockSpec((1, NCAT), lambda s: (0, 0)),
                ],
                out_specs=[
                    pl.BlockSpec((1, B, OP), lambda s: (s, 0, 0)),
                    pl.BlockSpec((B, HP), lambda s: (0, 0)),
                ],
                scratch_shapes=[pltpu.VMEM((B, HP), jnp.float32)],
            ),
            compiler_params=pltpu.CompilerParams(
                # SEQ axis is a recurrence (carried hidden state) -> arbitrary
                dimension_semantics=("arbitrary",)),
        )(seq, w_x, w_h, b)

        log_probs = logp_pad[:, :, :output_size]   # (SEQ, B, O)
        final_hidden = hid_pad[:, :hidden_size]    # (B, H)
        return log_probs, final_hidden

    return forward


def init_params(key, input_size, hidden_size, output_size):
    """Deterministic synthetic init mirroring nn.Linear's uniform(-k, k)."""
    k1, k2, k3, k4 = jax.random.split(key, 4)
    fan_in = input_size + hidden_size
    bound = 1.0 / (float(fan_in) ** 0.5)

    def u(k, shape):
        return jax.random.uniform(k, shape, jnp.float32, -bound, bound)

    # i2h: Linear(I+H -> H); i2o: Linear(I+H -> O); stored pre-transposed
    w_i2h = u(k1, (fan_in, hidden_size))
    b_h = u(k2, (hidden_size,))
    w_i2o = u(k3, (fan_in, output_size))
    b_o = u(k4, (output_size,))

    return {
        "w_xh": w_i2h[:input_size, :],
        "w_hh": w_i2h[input_size:, :],
        "b_h": b_h,
        "w_xo": w_i2o[:input_size, :],
        "w_ho": w_i2o[input_size:, :],
        "b_o": b_o,
    }


def pack_params(raw, input_size, hidden_size, output_size):
    """Host-side fusion + lane padding of the i2h / i2o weights."""
    I, H, O = input_size, hidden_size, output_size

    w_x = jnp.zeros((I, NCAT), jnp.float32)
    w_x = w_x.at[:, :H].set(raw["w_xh"])
    w_x = w_x.at[:, HP:HP + O].set(raw["w_xo"])

    w_h = jnp.zeros((HP, NCAT), jnp.float32)
    w_h = w_h.at[:H, :H].set(raw["w_hh"])
    w_h = w_h.at[:H, HP:HP + O].set(raw["w_ho"])

    b = jnp.zeros((1, NCAT), jnp.float32)
    b = b.at[0, :H].set(raw["b_h"])
    b = b.at[0, HP:HP + O].set(raw["b_o"])
    b = b.at[0, HP + O:].set(NEG_INF)   # neutralize softmax padding lanes

    return w_x, w_h, b


def reference_forward(t, hidden, raw):
    """Pure-JAX single-step reference for correctness checking."""
    pre_h = t @ raw["w_xh"] + hidden @ raw["w_hh"] + raw["b_h"]
    new_h = jnp.tanh(pre_h)
    logits = t @ raw["w_xo"] + hidden @ raw["w_ho"] + raw["b_o"]
    return jax.nn.log_softmax(logits, axis=-1), new_h


if __name__ == "__main__":
    B = 2          # batch
    I = 8          # input features per time step
    H = 32         # hidden_size
    O = 4          # output_size
    SEQ = 8        # number of time steps

    key = jax.random.PRNGKey(0)
    k_param, k_seq = jax.random.split(key)
    raw = init_params(k_param, I, H, O)
    w_x, w_h, b = pack_params(raw, I, H, O)

    seq = jax.random.normal(k_seq, (SEQ, B, I), jnp.float32)

    forward = make_forward(H, O)
    log_probs, final_hidden = forward(seq, w_x, w_h, b)
    log_probs = jax.block_until_ready(log_probs)
    final_hidden = jax.block_until_ready(final_hidden)

    # Pure-JAX per-step reference recurrence.
    hidden_ref = jnp.zeros((B, H), jnp.float32)
    ref_steps = []
    for s in range(SEQ):
        lp, hidden_ref = reference_forward(seq[s], hidden_ref, raw)
        ref_steps.append(lp)
    ref_log_probs = jnp.stack(ref_steps)

    assert log_probs.shape == (SEQ, B, O)
    assert final_hidden.shape == (B, H)
    assert jnp.allclose(log_probs, ref_log_probs, atol=2e-5, rtol=2e-5)
    assert jnp.allclose(final_hidden, hidden_ref, atol=2e-5, rtol=2e-5)

    print("KERNEL_OK")
</pallas_src>

<mosaic_0001>
module attributes {stable_mosaic.version = 11 : i64} {
  func.func @fused_rnn_kernel(%arg0: i32, %arg1: memref<1x2x8xf32, #tpu.memory_space<vmem>>, %arg2: memref<8x256xf32, #tpu.memory_space<vmem>>, %arg3: memref<128x256xf32, #tpu.memory_space<vmem>>, %arg4: memref<1x256xf32, #tpu.memory_space<vmem>>, %arg5: memref<1x2x128xf32, #tpu.memory_space<vmem>>, %arg6: memref<2x128xf32, #tpu.memory_space<vmem>>, %arg7: memref<2x128xf32, #tpu.memory_space<vmem>>) attributes {dimension_semantics = [#tpu.dimension_semantics<arbitrary>], iteration_bounds = array<i64: 8>, scalar_prefetch = 0 : i64, scratch_operands = 1 : i64, tpu.core_type = #tpu.core_type<tc>, window_params = [{transform_indices = @transform_0, window_bounds = array<i64: 1, 2, 8>}, {pipeline_mode = #tpu.pipeline_mode<synchronous>, transform_indices = @transform_1, window_bounds = array<i64: 8, 256>}, {pipeline_mode = #tpu.pipeline_mode<synchronous>, transform_indices = @transform_2, window_bounds = array<i64: 128, 256>}, {pipeline_mode = #tpu.pipeline_mode<synchronous>, transform_indices = @transform_3, window_bounds = array<i64: 1, 256>}, {transform_indices = @transform_4, window_bounds = array<i64: 1, 2, 128>}, {pipeline_mode = #tpu.pipeline_mode<synchronous>, transform_indices = @transform_5, window_bounds = array<i64: 2, 128>}]} {
    %c0_i32 = arith.constant 0 : i32
    %0 = arith.cmpi eq, %arg0, %c0_i32 : i32
    %1 = arith.extui %0 : i1 to i32
    %c0_i32_0 = arith.constant 0 : i32
    %2 = arith.cmpi ne, %1, %c0_i32_0 : i32
    scf.if %2 {
      %cst_20 = arith.constant 0.000000e+00 : f32
      %34 = vector.broadcast %cst_20 : f32 to vector<2x128xf32>
      %c0_21 = arith.constant 0 : index
      %c0_22 = arith.constant 0 : index
      %35 = vector.load %arg7[%c0_21, %c0_22] : memref<2x128xf32, #tpu.memory_space<vmem>>, vector<2x128xf32>
      tpu.vector_store %arg7[%c0_21, %c0_22], %34 {strides = array<i32>} : memref<2x128xf32, #tpu.memory_space<vmem>>, vector<2x128xf32>,
    } else {
    }
    %c0 = arith.constant 0 : index
    %c0_1 = arith.constant 0 : index
    %c0_2 = arith.constant 0 : index
    %3 = vector.load %arg1[%c0, %c0_1, %c0_2] : memref<1x2x8xf32, #tpu.memory_space<vmem>>, vector<1x2x8xf32>
    %4 = vector.shape_cast %3 : vector<1x2x8xf32> to vector<2x8xf32>
    %c0_3 = arith.constant 0 : index
    %c0_4 = arith.constant 0 : index
    %5 = vector.load %arg7[%c0_3, %c0_4] : memref<2x128xf32, #tpu.memory_space<vmem>>, vector<2x128xf32>
    %c0_5 = arith.constant 0 : index
    %c0_6 = arith.constant 0 : index
    %6 = vector.load %arg2[%c0_5, %c0_6] : memref<8x256xf32, #tpu.memory_space<vmem>>, vector<8x256xf32>
    %cst = arith.constant dense<0.000000e+00> : vector<2x256xf32>
    %7 = tpu.matmul %4, %6, %cst {dimension_numbers = #tpu.dot_dimension_numbers<[1], [0], [0], [1], [0, 0, 1, 1], [], []>} : vector<2x8xf32>, vector<8x256xf32>, vector<2x256xf32> -> vector<2x256xf32>
    %c0_7 = arith.constant 0 : index
    %c0_8 = arith.constant 0 : index
    %8 = vector.load %arg3[%c0_7, %c0_8] : memref<128x256xf32, #tpu.memory_space<vmem>>, vector<128x256xf32>
    %cst_9 = arith.constant dense<0.000000e+00> : vector<2x256xf32>
    %9 = tpu.matmul %5, %8, %cst_9 {dimension_numbers = #tpu.dot_dimension_numbers<[1], [0], [0], [1], [0, 0, 1, 1], [], []>} : vector<2x128xf32>, vector<128x256xf32>, vector<2x256xf32> -> vector<2x256xf32>
    %10 = arith.addf %7, %9 : vector<2x256xf32>
    %c0_10 = arith.constant 0 : index
    %c0_11 = arith.constant 0 : index
    %11 = vector.load %arg4[%c0_10, %c0_11] : memref<1x256xf32, #tpu.memory_space<vmem>>, vector<1x256xf32>
    %12 = vector.broadcast %11 : vector<1x256xf32> to vector<2x256xf32>
    %13 = arith.addf %10, %12 : vector<2x256xf32>
    %14 = vector.extract_strided_slice %13 {offsets = [0, 0], sizes = [2, 128], strides = [1, 1]} : vector<2x256xf32> to vector<2x128xf32>
    %15 = math.tanh %14 : vector<2x128xf32>
    %16 = vector.extract_strided_slice %13 {offsets = [0, 128], sizes = [2, 128], strides = [1, 1]} : vector<2x256xf32> to vector<2x128xf32>
    %cst_12 = arith.constant dense<0xFF800000> : vector<2xf32>
    %17 = vector.multi_reduction <maximumf>, %16, %cst_12 [1] : vector<2x128xf32> to vector<2xf32>
    %18 = vector.shape_cast %17 : vector<2xf32> to vector<2x1xf32>
    %19 = vector.broadcast %18 : vector<2x1xf32> to vector<2x128xf32>
    %20 = arith.subf %16, %19 : vector<2x128xf32>
    %21 = math.exp %20 : vector<2x128xf32>
    %cst_13 = arith.constant dense<0.000000e+00> : vector<2xf32>
    %22 = vector.multi_reduction <add>, %21, %cst_13 [1] : vector<2x128xf32> to vector<2xf32>
    %23 = vector.shape_cast %22 : vector<2xf32> to vector<2x1xf32>
    %24 = math.log %23 : vector<2x1xf32>
    %25 = vector.broadcast %24 : vector<2x1xf32> to vector<2x128xf32>
    %26 = arith.subf %20, %25 : vector<2x128xf32>
    %c0_14 = arith.constant 0 : index
    %c0_15 = arith.constant 0 : index
    %c0_16 = arith.constant 0 : index
    %27 = vector.load %arg5[%c0_14, %c0_15, %c0_16] : memref<1x2x128xf32, #tpu.memory_space<vmem>>, vector<1x2x128xf32>
    %28 = vector.shape_cast %27 : vector<1x2x128xf32> to vector<2x128xf32>
    %29 = vector.shape_cast %26 : vector<2x128xf32> to vector<1x2x128xf32>
    tpu.vector_store %arg5[%c0_14, %c0_15, %c0_16], %29 {strides = array<i32>} : memref<1x2x128xf32, #tpu.memory_space<vmem>>, vector<1x2x128xf32>,
    %c0_17 = arith.constant 0 : index
    %c0_18 = arith.constant 0 : index
    %30 = vector.load %arg7[%c0_17, %c0_18] : memref<2x128xf32, #tpu.memory_space<vmem>>, vector<2x128xf32>
    tpu.vector_store %arg7[%c0_17, %c0_18], %15 {strides = array<i32>} : memref<2x128xf32, #tpu.memory_space<vmem>>, vector<2x128xf32>,
    %c7_i32 = arith.constant 7 : i32
    %31 = arith.cmpi eq, %arg0, %c7_i32 : i32
    %32 = arith.extui %31 : i1 to i32
    %c0_i32_19 = arith.constant 0 : i32
    %33 = arith.cmpi ne, %32, %c0_i32_19 : i32
    scf.if %33 {
      %c0_20 = arith.constant 0 : index
      %c0_21 = arith.constant 0 : index
      %34 = vector.load %arg6[%c0_20, %c0_21] : memref<2x128xf32, #tpu.memory_space<vmem>>, vector<2x128xf32>
      tpu.vector_store %arg6[%c0_20, %c0_21], %15 {strides = array<i32>} : memref<2x128xf32, #tpu.memory_space<vmem>>, vector<2x128xf32>,
    } else {
    }
    return
  }
  func.func @transform_0(%arg0: i32) -> (i32, i32, i32) {
    %c0_i32 = arith.constant 0 : i32
    %c0_i32_0 = arith.constant 0 : i32
    %c0_i32_1 = arith.constant 0 : i32
    return %arg0, %c0_i32, %c0_i32_0 : i32, i32, i32
  }
  func.func @transform_1(%arg0: i32) -> (i32, i32) {
    %c0_i32 = arith.constant 0 : i32
    %c0_i32_0 = arith.constant 0 : i32
    %c0_i32_1 = arith.constant 0 : i32
    return %c0_i32, %c0_i32_0 : i32, i32
  }
  func.func @transform_2(%arg0: i32) -> (i32, i32) {
    %c0_i32 = arith.constant 0 : i32
    %c0_i32_0 = arith.constant 0 : i32
    %c0_i32_1 = arith.constant 0 : i32
    return %c0_i32, %c0_i32_0 : i32, i32
  }
  func.func @transform_3(%arg0: i32) -> (i32, i32) {
    %c0_i32 = arith.constant 0 : i32
    %c0_i32_0 = arith.constant 0 : i32
    %c0_i32_1 = arith.constant 0 : i32
    return %c0_i32, %c0_i32_0 : i32, i32
  }
  func.func @transform_4(%arg0: i32) -> (i32, i32, i32) {
    %c0_i32 = arith.constant 0 : i32
    %c0_i32_0 = arith.constant 0 : i32
    %c0_i32_1 = arith.constant 0 : i32
    return %arg0, %c0_i32, %c0_i32_0 : i32, i32, i32
  }
  func.func @transform_5(%arg0: i32) -> (i32, i32) {
    %c0_i32 = arith.constant 0 : i32
    %c0_i32_0 = arith.constant 0 : i32
    %c0_i32_1 = arith.constant 0 : i32
    return %c0_i32, %c0_i32_0 : i32, i32
  }
}

</mosaic_0001>

<bundles_post_ra>
// kernel: forward.1
= control target key start
LH: loop header
LB: loop body
LE: loop exit
PB: predicated region body
PF: predicated region fallthrough
CT: control target
= control target key end

     0   :  { %11 = vsyncpa [#allocation4], 0  ;;  %s1033_s0 = inlined_call_operand.hbm [shape: f32[8,2,8], index: 0, kind: input, shape index: {}]   ;;  %s1034_s1 = inlined_call_operand.hbm [shape: f32[8,256], index: 1, kind: input, shape index: {}]   ;;  %s1035_s2 = inlined_call_operand.hbm [shape: f32[128,256], index: 2, kind: input, shape index: {}]   ;;  %s1036_s3 = inlined_call_operand.vmem [shape: f32[1,256], index: 3, kind: input, shape index: {}]   ;;  %s1037_s4 = inlined_call_operand.vmem [shape: f32[8,2,128], index: 4, kind: output, shape index: {0}]   ;;  %s1038_s5 = inlined_call_operand.hbm [shape: f32[2,128], index: 5, kind: output, shape index: {1}]  }
   0x1   :  { %13 = vsyncpa [#allocation4 + $0x1], 0 }
   0x2   :  { %14 = vsyncpa [#allocation7], 0 }
   0x3   :  { %15 = vsyncpa [#allocation5], 0  ;;  %s878_s18 = smov 0   ;;  %s880_s19 = smov 0  }
   0x4   :  { %s882_s20 = smov 0   ;;  %s884_s21 = smov 0  }
   0x5 LB: > { %s897_s22 = sadd.s32 4294967295, %s838_s21   ;;  %p41_p0 = scmp.ne.s32.totalorder %s830_s19, %s826_s18  ;;  %s838_s21 = sphi %s884_s21, %s1054_s21   ;;  %s834_s20 = sphi %s882_s20, %s1053_s20   ;;  %s830_s19 = sphi %s880_s19, %s1052_s19   ;;  %s826_s18 = sphi %s878_s18, %s1051_s18  }
   0x6   : > { %p1039_p1 = scmp.eq.s32.totalorder %s897_s22, 0  ;;  %p597_p2 = scmp.ge.s32.totalorder %s838_s21, 1 }
   0x7   : > { %p162_p3 = scmp.lt.s32.totalorder %s838_s21, 9  ;;  %s840_s25 = smov [#allocation6]  }
   0x8   : > { %p906_p5 = por %p1039_p1, %p41_p0  ;;  %s175_s26 = sshll.u32 %s840_s25, 4  ;;  %s176_s26 = int_to_ptr.vmem [resolvable:$true] %s175_s26 }
   0x9   : > { %p910_p6 = pnand %p597_p2, %p162_p3  ;;  %s841_s27 = smov [#allocation8]  }
   0xa   : > { %s1042_s23 = scalar_select %p906_p5, 1, 0 }
   0xb   : > { %s1043_s24 = scalar_select %p910_p6, 1, 0 }
   0xc   : > { %p629_p7 = pneg %p910_p6  ;;  %s185_s28 = sshll.u32 %s841_s27, 4  ;;  %s186_s28 = int_to_ptr.vmem [resolvable:$true] %s185_s28 }
   0xd   : > { %s703_s30 = scalar_lea.vmem %s176_s26, 256  ;;  %p711_p13 = scmp.lt.s32.totalorder %s176_s26, %s176_s26 }
   0xe   : > { %p918_p8 = pnand %p629_p7, %p1039_p1  ;;  %p704_p10 = scmp.ne.s32.totalorder %s176_s26, %s703_s30 }
   0xf   : > { %p712_p0 = scmp.lt.s32.totalorder %s703_s30, %s703_s30 }
  0x10   : > { %p694_p9 = pneg %p918_p8 }
  0x11   : > { %p713_p2 = por %p712_p0, %p711_p13 }
  0x12   : > { %p706_p11 = pnand %p704_p10, %p694_p9 }
  0x14   : > { %p707_p12 = pneg %p706_p11 }
  0x16   : > { %p714_p3 = pnand %p713_p2, %p707_p12 }
  0x18   : > { %717 = shalt.err (!%p714_p3)
}
  0x19   : > { %632 = dma.hbm_to_vmem [thread:$0]  (!%p918_p8), %s1034_s1, 256, %s176_s26, [#allocation7]  }
  0x1a   : > { %s729_s8 = scalar_lea.vmem %s186_s28, 4096  ;;  %p737_p10 = scmp.lt.s32.totalorder %s186_s28, %s186_s28 }
  0x1b   : > { %p730_p7 = scmp.ne.s32.totalorder %s186_s28, %s729_s8  ;;  %p738_p11 = scmp.lt.s32.totalorder %s729_s8, %s729_s8 }
  0x1d   : > { %p732_p4 = pnand %p730_p7, %p694_p9  ;;  %p739_p5 = por %p738_p11, %p737_p10 }
  0x1f   : > { %p733_p1 = pneg %p732_p4 }
  0x21   : > { %p740_p6 = pnand %p739_p5, %p733_p1 }
  0x23   : > { %743 = shalt.err (!%p740_p6)
}
  0x24   : > { %s842_s9 = smov 256   ;;  %s843_s10 = smov 16  }
  0x25   : > { %635 = dma.hbm_to_vmem [thread:$0]  (!%p918_p8), %s1035_s2, 4096, %s186_s28, [#allocation7], %s842_s9, %s842_s9, %s843_s10  }
  0x26   : > { %s941_s13 = sadd.s32 1, %s838_s21   ;;  %s28_s14 = sadd.s32 1, %s834_s20 }
  0x27   : > { %s25_s15 = ssub.s32 %s838_s21, %s941_s13  ;;  %p35_p1 = scmp.ne.s32.totalorder %s834_s20, %s830_s19 }
  0x28   : > { %p26_p4 = scmp.eq.s32.totalorder %s25_s15, 0  ;;  %p36_p5 = scmp.eq.s32.totalorder %s838_s21, 0 }
  0x29   : > { %p642_p6 = scmp.lt.s32.totalorder %s838_s21, 8  ;;  %s202_s16 = sand.u32 1, %s834_s20  }
  0x2a   : > { %s952_s17 = scalar_select %p26_p4, %s834_s20, %s28_s14  }
  0x2b   : > { %p37_p9 = por %p36_p5, %p35_p1  ;;  %s601_s18 = sshll.u32 %s202_s16, 1 }
  0x2c   : > { %s602_s25 = sshll.u32 %s838_s21, 5  ;;  %s206_s28 = scalar_lea.vmem [#allocation3], %s601_s18 }
  0x2d   : > { %s958_s29 = scalar_lea.hbm %s1033_s0, %s602_s25  ;;  %s213_s30 = sshll.u32 %s206_s28, 4  ;;  %s214_s30 = int_to_ptr.vmem [resolvable:$true] %s213_s30 }
  0x2e   : > { %p960_p8 = pnand %p642_p6, %p37_p9  ;;  %s203_s7 = scalar_lea.sflag [#allocation4], %s202_s16 }
  0x2f   : > { %s744_s8 = scalar_lea.hbm %s958_s29, 32  ;;  %s749_s10 = scalar_lea.hbm %s1033_s0, 256 }
  0x30   : > { %p745_p12 = scmp.ne.s32.totalorder %s958_s29, %s744_s8  ;;  %p746_p13 = pneg %p960_p8 }
  0x31   : > { %p750_p3 = scmp.lt.s32.totalorder %s958_s29, %s1033_s0  ;;  %p751_p7 = scmp.lt.s32.totalorder %s749_s10, %s744_s8 }
  0x32   : > { %p747_p0 = pnand %p746_p13, %p745_p12 }
  0x33   : > { %p752_p10 = por %p751_p7, %p750_p3 }
  0x34   : > { %p748_p2 = pneg %p747_p0 }
  0x36   : > { %p753_p11 = pnand %p752_p10, %p748_p2 }
  0x38   : > { %756 = shalt.err (!%p753_p11)
}
  0x39   : > { %s757_s14 = scalar_lea.vmem %s214_s30, 32  ;;  %s844_s15 = smov [#allocation3]  }
  0x3a   : > { %p758_p1 = scmp.ne.s32.totalorder %s214_s30, %s757_s14  ;;  %s762_s16 = sshll.u32 %s844_s15, 4  ;;  %s763_s16 = int_to_ptr.vmem [resolvable:$false] %s762_s16 }
  0x3b   : > { %s764_s18 = scalar_lea.vmem %s763_s16, 64  ;;  %p765_p6 = scmp.lt.s32.totalorder %s214_s30, %s763_s16 }
  0x3c   : > { %p760_p4 = pnand %p758_p1, %p746_p13  ;;  %p766_p9 = scmp.lt.s32.totalorder %s764_s18, %s757_s14 }
  0x3e   : > { %p761_p5 = pneg %p760_p4  ;;  %p767_p12 = por %p766_p9, %p765_p6 }
  0x40   : > { %p768_p0 = pnand %p767_p12, %p761_p5 }
  0x42   : > { %771 = shalt.err (!%p768_p0)
}
  0x43   : > { %639 = dma.hbm_to_vmem [thread:$0]  (!%p960_p8), %s958_s29, 32, %s214_s30, %s203_s7  }
  0x44   : > { %p1046_p2 = scmp.ne.s32.totalorder %s1043_s24, 0 }
  0x45   : > { %s224_s25 = sand.u32 (!%p1046_p2), 1, %s830_s19   ;;  %p1047_p13 = scmp.ne.s32.totalorder (!%p1046_p2), %s1042_s23, 0 }
  0x46   : > { %222 = sbr.rel (%p1046_p2) target bundleno = 652 (0x28c), region = 36  ;;  %s981_s26 = sshll.u32 (!%p1046_p2), %s224_s25, 1 }
  0x47   : > { %s225_s27 = scalar_lea.sflag (!%p1046_p2), [#allocation4], %s224_s25  ;;  %s228_s28 = scalar_lea.vmem (!%p1046_p2), [#allocation3], %s981_s26 }
  0x4b   : > { %813 = dma.done.wait (%p1047_p13), %s225_s27, 32  }
  0x4c   : > { %815 = vsyncadd (%p1047_p13), %s225_s27, 4294967264  ;;  %p1048_p3 = scmp.eq.s32.totalorder %s897_s22, 0 }
  0x4e   : > { %817 = dma.done.wait (%p1048_p3), [#allocation7], 4352   ;;  %p1049_p8 = pmov %p1048_p3 }
  0x4f   : > { %p262_p7 = scmp.lt.s32.totalorder %s897_s22, 7  ;;  %p1050_p10 = scmp.ne.s32.totalorder %s897_s22, 0 }
  0x50   : > { %819 = vsyncadd (%p1049_p8), [#allocation7], 4294962944 }
  0x51   : > { %s263_s24 = scalar_select %p262_p7, %s897_s22, 7 }
  0x52   : > { %269 = sbr.rel (%p1050_p10) target bundleno = 89 (0x59), region = 52 }
  0x53   : > { %s607_s29 = sshll.u32 %s263_s24, 1 }
  0x54   : > { %s997_s7 = scalar_lea.vmem %s1037_s4, %s607_s29 }
  0x57   : > { %v845_v0 = vmov 0.0  }
  0x58   : > { %270 = vst [vmem:[#allocation2] sm:$0x3] %v845_v0 }
  0x59 PF: > { %v306_v1 = vld [vmem:[#allocation8 + $0xf8] sm:$0xff]  ;;  %v305_v2 = vld [vmem:[#allocation8 + $0xf0] sm:$0xff]  ;;  %v304_v3 = vld [vmem:[#allocation8 + $0xe8] sm:$0xff]  ;;  %v846_v5 = vmov 0.0   ;;  %vm378_vm0 = vcmask 64512   ;;  %v455_v38 = vlaneseq  ;;  %vm468_vm1 = vcmask 1041408  }
  0x5a   : > { %307 = vmatprep.subr.mxu0 %v306_v1  ;;  %v303_v4 = vld [vmem:[#allocation8 + $0xe0] sm:$0xff]  ;;  %446 = vmatprep.mubr.f32.mxu1 %v846_v5  ;;  %v302_v6 = vld [vmem:[#allocation8 + $0xd8] sm:$0xff]  ;;  %v301_v7 = vld [vmem:[#allocation8 + $0xd0] sm:$0xff]  ;;  %p610_p11 = scmp.ne.s32.totalorder %s897_s22, 7 }
  0x5b   : > { %308 = vmatpush1.msra.mxu0 %v305_v2  ;;  %371 = vmatprep.mubr.f32.mxu0 %v846_v5  ;;  %v300_v8 = vld [vmem:[#allocation8 + $0xc8] sm:$0xff]  ;;  %v299_v9 = vld [vmem:[#allocation8 + $0xc0] sm:$0xff]  ;;  %v298_v10 = vld [vmem:[#allocation8 + $0xb8] sm:$0xff]  ;;  %v456_v39 = vshrl.u32 %v455_v38, 7 }
  0x5c   : > { %309 = vmatprep.subr.mxu0 %v304_v3  ;;  %v297_v11 = vld [vmem:[#allocation8 + $0xb0] sm:$0xff]  ;;  %v296_v12 = vld [vmem:[#allocation8 + $0xa8] sm:$0xff]  ;;  %v295_v13 = vld [vmem:[#allocation8 + $0xa0] sm:$0xff] }
  0x5d   : > { %310 = vmatpush1.msra.mxu0 %v303_v4  ;;  %v274_v14 = vld [vmem:[#allocation6 + $0x8] sm:$0xff]  ;;  %v273_v16 = vld [vmem:[#allocation6] sm:$0xff]  ;;  %v271_v18 = vld [vmem:[%s228_s28] sm:$0x3]  ;;  %v457_v40 = vsub.s32 0, %v456_v39  ;;  %v461_v42 = vsub.s32 1, %v456_v39 }
  0x5e   : > { %311 = vmatprep.subr.mxu0 %v302_v6  ;;  %v294_v15 = vld [vmem:[#allocation8 + $0x98] sm:$0xff]  ;;  %412 = vmatprep.subr.mxu1 %v274_v14  ;;  %v293_v17 = vld [vmem:[#allocation8 + $0x90] sm:$0xff]  ;;  %v292_v19 = vld [vmem:[#allocation8 + $0x88] sm:$0xff] }
  0x5f   : > { %312 = vmatpush1.msra.mxu0 %v301_v7  ;;  %413 = vmatpush1.msra.mxu1 %v273_v16  ;;  %v291_v20 = vld [vmem:[#allocation8 + $0x80] sm:$0xff]  ;;  %v290_v21 = vld [vmem:[#allocation8 + $0x78] sm:$0xff]  ;;  %v289_v22 = vld [vmem:[#allocation8 + $0x70] sm:$0xff] }
  0x60   : > { %313 = vmatprep.subr.mxu0 %v300_v8  ;;  %609 = vmatmul.mubr.msk.f32.vlgmr.msra.gmra.mxu1 %vm378_vm0, %v271_v18  ;;  %v288_v23 = vld [vmem:[#allocation8 + $0x68] sm:$0xff]  ;;  %v287_v24 = vld [vmem:[#allocation8 + $0x60] sm:$0xff]  ;;  %v286_v25 = vld [vmem:[#allocation8 + $0x58] sm:$0xff] }
  0x61   : > { %314 = vmatpush1.msra.mxu0 %v299_v9  ;;  %v285_v26 = vld [vmem:[#allocation8 + $0x50] sm:$0xff]  ;;  %v284_v27 = vld [vmem:[#allocation8 + $0x48] sm:$0xff]  ;;  %v283_v28 = vld [vmem:[#allocation8 + $0x40] sm:$0xff] }
  0x62   : > { %315 = vmatprep.subr.mxu0 %v298_v10  ;;  %v282_v29 = vld [vmem:[#allocation8 + $0x38] sm:$0xff]  ;;  %v281_v30 = vld [vmem:[#allocation8 + $0x30] sm:$0xff]  ;;  %v280_v31 = vld [vmem:[#allocation8 + $0x28] sm:$0xff] }
  0x63   : > { %316 = vmatpush1.msra.mxu0 %v297_v11  ;;  %v279_v32 = vld [vmem:[#allocation8 + $0x20] sm:$0xff]  ;;  %v278_v33 = vld [vmem:[#allocation8 + $0x18] sm:$0xff]  ;;  %v277_v34 = vld [vmem:[#allocation8 + $0x10] sm:$0xff] }
  0x64   : > { %317 = vmatprep.subr.mxu0 %v296_v12  ;;  %v276_v35 = vld [vmem:[#allocation8 + $0x8] sm:$0xff]  ;;  %v275_v36 = vld [vmem:[#allocation8] sm:$0xff] }
  0x65   : > { %318 = vmatpush1.msra.mxu0 %v295_v13  ;;  %v272_v37 = vld [vmem:[#allocation2] sm:$0x3] }
  0x66   : > { %319 = vmatprep.subr.mxu0 %v294_v15  ;;  %v453_v41 = vld [vmem:[%s1036_s3] sm:$0x3] }
  0x67   : > { %320 = vmatpush1.msra.mxu0 %v293_v17  ;;  %v458_v44 = vrot.slane %v453_v41, %v457_v40  ;;  %v462_v47 = vrot.slane %v453_v41, %v461_v42 }
  0x68   : > { %321 = vmatprep.subr.mxu0 %v292_v19 }
  0x69   : > { %322 = vmatpush1.msra.mxu0 %v291_v20 }
  0x6a   : > { %323 = vmatprep.subr.mxu0 %v290_v21 }
  0x6b   : > { %324 = vmatpush1.msra.mxu0 %v289_v22 }
  0x6c   : > { %325 = vmatprep.subr.mxu0 %v288_v23 }
  0x6d   : > { %326 = vmatpush1.msra.mxu0 %v287_v24 }
  0x6e   : > { %327 = vmatprep.subr.mxu0 %v286_v25 }
  0x6f   : > { %328 = vmatpush1.msra.mxu0 %v285_v26 }
  0x70   : > { %329 = vmatprep.subr.mxu0 %v284_v27 }
  0x71   : > { %330 = vmatpush1.msra.mxu0 %v283_v28 }
  0x72   : > { %331 = vmatprep.subr.mxu0 %v282_v29 }
  0x73   : > { %332 = vmatpush1.msra.mxu0 %v281_v30 }
  0x74   : > { %333 = vmatprep.subr.mxu0 %v280_v31 }
  0x75   : > { %334 = vmatpush1.msra.mxu0 %v279_v32 }
  0x76   : > { %335 = vmatprep.subr.mxu0 %v278_v33 }
  0x77   : > { %336 = vmatpush1.msra.mxu0 %v277_v34 }
  0x78   : > { %337 = vmatprep.subr.mxu0 %v276_v35 }
  0x79   : > { %338 = vmatpush1.msra.mxu0 %v275_v36 }
  0x7a   : > { %372 = vmatmul.mubr.f32.vlgmr.msra.gmra.mxu0 %v272_v37 }
 0x120   : > { %v448_v43 = vpop.f32.mrf.mxu1 }
 0x122   : > { %v450_v48 = vpop.f32.mrf.mxu1 }
 0x13a   : > { %v373_v45 = vpop.f32.mrf.mxu0 }
 0x13b   : > { %v449_v46 = vadd.f32 %v448_v43, %v373_v45 }
 0x13c   : > { %v375_v49 = vpop.f32.mrf.mxu0 }
 0x13d   : > { %v465_v50 = vadd.f32 %v458_v44, %v449_v46  ;;  %v451_v51 = vadd.f32 %v450_v48, %v375_v49 }
 0x13f   : > { %686 = vtanh.f32 %v465_v50  ;;  %v466_v52 = vadd.f32 %v462_v47, %v451_v51 }
 0x141   : > { %v469_v53 = vsel %vm468_vm1, %v466_v52, -inf }
 0x142   : > { %470 = vmax.xlane.f32.xlu0 %v469_v53 }
 0x14c   : > { %v687_v54 = vpop.eup %686 }
 0x14d   : > { %482 = vst [vmem:[#allocation2] sm:$0x3] %v687_v54 }
 0x1cb   : > { %v471_v55 = vpop.xlane.xlu0 %470 }
 0x1cc   : > { %v472_v56 = vsub.f32 %v466_v52, %v471_v55 }
 0x1ce   : > { %v473_v57 = vmul.f32 1.442695, %v472_v56 }
 0x1d0   : > { %688 = vpow2.f32 %v473_v57 }
 0x1dd   : > { %v689_v58 = vpop.eup %688 }
 0x1de   : > { %v475_v59 = vsel %vm468_vm1, %v689_v58, 0.0 }
 0x1df   : > { %476 = vadd.xlane.f32.xlu0 %v475_v59 }
 0x268   : > { %v477_v60 = vpop.xlane.xlu0 %476 }
 0x269   : > { %690 = vlog2.f32 %v477_v60 }
 0x276   : > { %v691_v61 = vpop.eup %690 }
 0x277   : > { %v479_v62 = vmul.f32 0.6931472, %v691_v61  ;;  %486 = sbr.rel (%p610_p11) target bundleno = 637 (0x27d), region = 56 }
 0x279   : > { %v480_v63 = vsub.f32 %v472_v56, %v479_v62 }
 0x27b   : > { %481 = vst [vmem:[%s997_s7] sm:$0x3] %v480_v63 }
 0x27c   : > { %487 = vst [vmem:[#allocation9] sm:$0x3] %v687_v54 }
 0x27d PF: > { %p645_p1 = scmp.eq.s32.totalorder %s897_s22, 7  ;;  %s847_s21 = smov [#allocation9]  }
 0x27e   : > { %s502_s9 = sshll.u32 %s847_s21, 4  ;;  %s503_s9 = int_to_ptr.vmem [resolvable:$true] %s502_s9 }
 0x27f   : > { %s772_s10 = scalar_lea.vmem %s503_s9, 32  ;;  %p779_p9 = scmp.lt.s32.totalorder %s503_s9, %s503_s9 }
 0x280   : > { %p773_p4 = scmp.ne.s32.totalorder %s503_s9, %s772_s10  ;;  %p780_p12 = scmp.lt.s32.totalorder %s772_s10, %s772_s10 }
 0x282   : > { %p774_p5 = pnand %p773_p4, %p645_p1  ;;  %p781_p0 = por %p780_p12, %p779_p9 }
 0x284   : > { %p775_p6 = pneg %p774_p5 }
 0x286   : > { %p782_p2 = pnand %p781_p0, %p775_p6 }
 0x288   : > { %785 = shalt.err (!%p782_p2)
}
 0x289   : > { %626 = dma.vmem_to_hbm [thread:$0]  (%p645_p1), %s503_s9, 32, %s1038_s5, [#allocation5]  }
 0x28a   : > { %821 = dma.done.wait (%p645_p1), [#allocation5], 32  }
 0x28b   : > { %823 = vsyncadd (%p645_p1), [#allocation5], 4294967264 }
 0x28c PF: > { %p18_p13 = scmp.ge.s32.totalorder %s941_s13, 10   ;;  %s1051_s18 = smov %s830_s19 }
 0x28d   : > { %s1052_s19 = smov %s834_s20  ;;  %s1053_s20 = smov %s952_s17 }
 0x28e   : > { %s1054_s21 = smov %s941_s13  ;;  %20 = sbr.rel (!%p18_p13) target bundleno = 5 (0x5), region = 101 }
 0x293   :  { %522 = vsyncpa [#allocation4], 1 }
 0x294   :  { %524 = vsyncpa [#allocation4 + $0x1], 1 }
 0x295   :  { %525 = vsyncpa [#allocation7], 1 }
 0x296   :  { %526 = vsyncpa [#allocation5], 1 }
 0x297   :  { %528 = vsyncpa [#allocation5 + $0x1], 1 }

</bundles_post_ra>
